<compile_context>
chip_gen: v7x
topology: tpu7x:2x2x1
jax: 0.10.0
libtpu: 0.0.40
codegen_flags: <defaults>
</compile_context>

<pallas_src>
import functools
import math

import jax
import jax.numpy as jnp
from jax.experimental import pallas as pl
from jax.experimental.pallas import tpu as pltpu


def _cdiv(a, b):
    return (a + b - 1) // b


def _round_up(a, b):
    return _cdiv(a, b) * b


def _ego_attention_kernel(x_ref, bias_ref, wkv_ref, wqrep_ref, ssel_ref,
                          sumb_ref, pexp_ref, wc2_ref, res_ref, attn_ref,
                          *, feature_size, heads, n_entities):
    F = feature_size
    E = n_entities
    H = heads
    Fh = F // H
    scale = 1.0 / math.sqrt(Fh)
    cdt = wkv_ref.dtype                     # MXU input dtype (bf16 perf / f32 validation)

    x = x_ref[...]                          # (BB, E*F)  lane-dense [ego | others] features
    ego = x[:, :F]                          # (BB, F)    ego features (entity 0)

    # Fused block-diagonal [K | V] projection: one MXU matmul, result stays lane-dense.
    kv = jnp.dot(x, wkv_ref[...], preferred_element_type=jnp.float32)      # (BB, 2*E*F)
    k = kv[:, :E * F]                                                       # (BB, E*F)
    v = kv[:, E * F:]                                                       # (BB, E*F)

    # Ego query projected *and* tiled over entities in one matmul
    # (wq_rep = Wq.T tiled E times along columns).
    q_rep = jnp.dot(ego, wqrep_ref[...], preferred_element_type=jnp.float32)  # (BB, E*F)

    # Per-head scores, lane-dense (BB, E*H): elementwise q*k, then a 0/1 selector matmul
    # reduces each head's Fh features (MXU slot, not VPU).
    qk = q_rep * k                                                           # (BB, E*F) f32
    scores = jnp.dot(qk.astype(cdt), ssel_ref[...],
                     preferred_element_type=jnp.float32) * scale             # (BB, E*H)
    scores = scores + bias_ref[...].astype(jnp.float32)                      # additive mask

    # Softmax over entities.  Subtracting the per-row global max (over all heads and
    # entities) is exact - it is constant along the entity axis for every head - and
    # avoids any strided cross-lane reduction.
    m = jnp.max(scores, axis=-1, keepdims=True)                              # (BB, 1)
    es = jnp.exp(scores - m)                                                 # (BB, E*H)
    # Per-head denominator summed over entities and broadcast back to all E*H lanes
    # with one tiny 0/1 matmul.
    den = jnp.dot(es.astype(cdt), sumb_ref[...],
                  preferred_element_type=jnp.float32)                        # (BB, E*H)
    p = es * pl.reciprocal(den, approx=True)                                 # (BB, E*H)

    attn_ref[...] = p.astype(attn_ref.dtype)                                 # ONE lane-dense store

    # Value aggregation: expand head probs to E*F lanes, weight V, then the entity
    # reduction and the attention_combine projection fused into a single (E*F, F) RHS.
    p_full = jnp.dot(p.astype(cdt), pexp_ref[...],
                     preferred_element_type=jnp.float32)                     # (BB, E*F)
    pv = p_full * v                                                          # (BB, E*F)
    combined = jnp.dot(pv.astype(cdt), wc2_ref[...],
                       preferred_element_type=jnp.float32)                   # (BB, F)

    res_ref[...] = ((combined + ego.astype(jnp.float32)) * 0.5).astype(res_ref.dtype)


def _build_constants(params, F, E, H, dtype):
    """Block-diagonal projection weights and 0/1 head-selector matrices (host-side)."""
    Fh = F // H
    wk_t = params["key_all"].T.astype(jnp.float32)               # (F, F)
    wv_t = params["value_all"].T.astype(jnp.float32)
    wq_t = params["query_ego"].T.astype(jnp.float32)
    wc_t = params["attention_combine"].T.astype(jnp.float32)

    eye_e = jnp.eye(E, dtype=jnp.float32)
    # Block-diagonal [K | V]: (E*F, 2*E*F).
    wk_bd = jnp.einsum("ab,fg->afbg", eye_e, wk_t).reshape(E * F, E * F)
    wv_bd = jnp.einsum("ab,fg->afbg", eye_e, wv_t).reshape(E * F, E * F)
    wkv_bd = jnp.concatenate([wk_bd, wv_bd], axis=1)

    # Ego Q projection tiled over entities along columns: (F, E*F).
    wq_rep = jnp.tile(wq_t, (1, E))

    # Head selector (E*F, E*H): 1 iff same entity and feature f belongs to head h.
    f_in_head = (jnp.arange(F)[:, None] // Fh
                 == jnp.arange(H)[None, :]).astype(jnp.float32)  # (F, H)
    ssel = jnp.einsum("ab,fh->afbh", eye_e, f_in_head).reshape(E * F, E * H)
    pexp = ssel.T                                                 # (E*H, E*F)

    # Per-head sum over entities, broadcast back to all E*H lanes: (E*H, E*H).
    h_eq = (jnp.arange(H)[:, None] == jnp.arange(H)[None, :]).astype(jnp.float32)
    sumb = jnp.tile(h_eq, (E, E))

    # Entity reduction fused with the attention_combine projection: (E*F, F).
    wc2 = jnp.tile(wc_t, (E, 1))

    return [c.astype(dtype) for c in (wkv_bd, wq_rep, ssel, sumb, pexp, wc2)]


def _choose_batch_block(B, block_b):
    bb = min(max(block_b, 16), _round_up(B, 16))
    bb = _round_up(bb, 16)
    # v7x has two TensorCores: keep >= 2 grid steps when the batch allows it so the
    # ("parallel",) batch grid can shard across both cores and pipeline.
    if _cdiv(B, bb) < 2 and bb >= 32:
        bb = _round_up(_cdiv(bb, 2), 16)
    return bb


def ego_attention_forward(ego, others, params, mask=None, heads=4,
                          block_b=512, compute_dtype=jnp.bfloat16):
    """ego: (B, 1, F) or (B, F); others: (B, N_others, F); mask: optional (B, E),
    truthy entries are masked out (torch masked_fill convention)."""
    B = others.shape[0]
    F = others.shape[-1]
    E = others.shape[1] + 1
    H = heads
    assert F % H == 0

    # [ego ; others] concatenated in the wrapper and streamed lane-dense as (B, E*F).
    inp = jnp.concatenate(
        [ego.reshape(B, 1, F).astype(jnp.float32), others.astype(jnp.float32)],
        axis=1).astype(compute_dtype)                                       # (B, E, F)

    # Additive mask bias, pre-expanded to the lane-dense (B, E*H) layout (e-major).
    if mask is None:
        bias = jnp.zeros((B, E), jnp.float32)
    else:
        bias = jnp.where(mask.reshape(B, E).astype(bool), -1e9, 0.0)
    bias = jnp.repeat(bias, H, axis=1).astype(compute_dtype)                # (B, E*H)

    bb = _choose_batch_block(B, block_b)
    num_blocks = _cdiv(B, bb)
    Bp = num_blocks * bb
    pad = Bp - B
    if pad:
        inp = jnp.pad(inp, ((0, pad), (0, 0), (0, 0)))
        bias = jnp.pad(bias, ((0, pad), (0, 0)))
    x2 = inp.reshape(Bp, E * F)

    consts = _build_constants(params, F, E, H, compute_dtype)

    kernel = functools.partial(_ego_attention_kernel,
                               feature_size=F, heads=H, n_entities=E)
    res, attn = pl.pallas_call(
        kernel,
        grid=(num_blocks,),
        out_shape=(jax.ShapeDtypeStruct((Bp, F), jnp.float32),
                   jax.ShapeDtypeStruct((Bp, E * H), jnp.float32)),
        in_specs=[
            pl.BlockSpec((bb, E * F), lambda i: (i, 0)),              # x2 (streamed)
            pl.BlockSpec((bb, E * H), lambda i: (i, 0)),              # bias (streamed)
            pl.BlockSpec((E * F, 2 * E * F), lambda i: (0, 0)),       # wkv block-diag
            pl.BlockSpec((F, E * F), lambda i: (0, 0)),               # wq_rep
            pl.BlockSpec((E * F, E * H), lambda i: (0, 0)),           # score selector
            pl.BlockSpec((E * H, E * H), lambda i: (0, 0)),           # per-head sum/bcast
            pl.BlockSpec((E * H, E * F), lambda i: (0, 0)),           # prob expansion
            pl.BlockSpec((E * F, F), lambda i: (0, 0)),               # fused combine
        ],
        out_specs=(
            pl.BlockSpec((bb, F), lambda i: (i, 0)),
            pl.BlockSpec((bb, E * H), lambda i: (i, 0)),
        ),
        compiler_params=pltpu.CompilerParams(
            dimension_semantics=("parallel",)),
    )(x2, bias, *consts)

    res = res[:B]
    attn = attn[:B]                                                   # (B, E*H), e-major
    # torch returns attention_matrix of shape (B, H, 1, E)
    attn = attn.reshape(B, E, H).transpose(0, 2, 1).reshape(B, H, 1, E)
    return res, attn


def _reference_forward(ego, others, params, mask=None, heads=4):
    """Pure-JAX reference reproducing the PyTorch EgoAttention.forward semantics."""
    B = others.shape[0]
    F = others.shape[-1]
    E = others.shape[1] + 1
    Fh = F // heads
    ego2 = ego.reshape(B, 1, F)
    inp = jnp.concatenate([ego2, others], axis=1)                     # (B, E, F)
    k = (inp @ params["key_all"].T).reshape(B, E, heads, Fh).transpose(0, 2, 1, 3)
    v = (inp @ params["value_all"].T).reshape(B, E, heads, Fh).transpose(0, 2, 1, 3)
    q = (ego2 @ params["query_ego"].T).reshape(B, 1, heads, Fh).transpose(0, 2, 1, 3)
    scores = jnp.matmul(q, jnp.swapaxes(k, -2, -1)) / math.sqrt(Fh)   # (B, H, 1, E)
    if mask is not None:
        m = mask.reshape(B, 1, 1, E).astype(bool)
        scores = jnp.where(m, -1e9, scores)
    p = jax.nn.softmax(scores, axis=-1)
    val = jnp.matmul(p, v)                                            # (B, H, 1, Fh)
    val = val.transpose(0, 2, 1, 3).reshape(B, F)
    result = ((val @ params["attention_combine"].T) + ego2[:, 0, :]) / 2
    return result, p


def _xavier_uniform(key, shape):
    fan_in, fan_out = shape[1], shape[0]
    limit = math.sqrt(6.0 / (fan_in + fan_out))
    return jax.random.uniform(key, shape, jnp.float32, -limit, limit)


if __name__ == "__main__":
    FEATURE_SIZE = 32
    HEADS = 4
    BATCH = 2
    N_OTHERS = 7          # -> 8 entities total

    key = jax.random.PRNGKey(0)
    k_ego, k_oth, kq, kk, kv, kc, k_big = jax.random.split(key, 7)

    ego = jax.random.normal(k_ego, (BATCH, 1, FEATURE_SIZE), jnp.float32)
    others = jax.random.normal(k_oth, (BATCH, N_OTHERS, FEATURE_SIZE), jnp.float32)

    # nn.Linear(feature_size, feature_size, bias=False) weights, torch layout (out, in).
    params = {
        "query_ego": _xavier_uniform(kq, (FEATURE_SIZE, FEATURE_SIZE)),
        "key_all": _xavier_uniform(kk, (FEATURE_SIZE, FEATURE_SIZE)),
        "value_all": _xavier_uniform(kv, (FEATURE_SIZE, FEATURE_SIZE)),
        "attention_combine": _xavier_uniform(kc, (FEATURE_SIZE, FEATURE_SIZE)),
    }

    TOL_F32 = dict(atol=2e-3, rtol=2e-3)    # approx-reciprocal softmax only
    TOL_BF16 = dict(atol=4e-2, rtol=4e-2)   # bf16 activations/weights (f32 accumulation)

    mask = jnp.array([[0, 0, 0, 0, 1, 1, 1, 1],
                      [0, 0, 0, 0, 0, 0, 1, 1]], dtype=jnp.bool_)

    # --- f32 validation path (tight tolerance), with and without mask ---
    for m in (None, mask):
        result, attn = ego_attention_forward(ego, others, params, mask=m, heads=HEADS,
                                             compute_dtype=jnp.float32)
        result = jax.block_until_ready(result)
        attn = jax.block_until_ready(attn)
        ref_result, ref_attn = _reference_forward(ego, others, params, mask=m, heads=HEADS)
        assert result.shape == (BATCH, FEATURE_SIZE)
        assert attn.shape == (BATCH, HEADS, 1, N_OTHERS + 1)
        assert jnp.allclose(result, ref_result, **TOL_F32)
        assert jnp.allclose(attn, ref_attn, **TOL_F32)

    # --- default bf16 perf path (looser tolerance) ---
    res_b16, attn_b16 = ego_attention_forward(ego, others, params, mask=mask, heads=HEADS)
    res_b16 = jax.block_until_ready(res_b16)
    ref_res_m, ref_attn_m = _reference_forward(ego, others, params, mask=mask, heads=HEADS)
    assert jnp.allclose(res_b16, ref_res_m, **TOL_BF16)
    assert jnp.allclose(attn_b16, ref_attn_m, **TOL_BF16)

    # --- larger batch exercising the multi-block batch grid (2 blocks + padding) ---
    kb1, kb2 = jax.random.split(k_big)
    ego_b = jax.random.normal(kb1, (40, 1, FEATURE_SIZE), jnp.float32)
    others_b = jax.random.normal(kb2, (40, N_OTHERS, FEATURE_SIZE), jnp.float32)
    ref_res_b, ref_attn_b = _reference_forward(ego_b, others_b, params, mask=None, heads=HEADS)

    res_b, attn_b = ego_attention_forward(ego_b, others_b, params, mask=None, heads=HEADS,
                                          compute_dtype=jnp.float32)
    res_b = jax.block_until_ready(res_b)
    assert jnp.allclose(res_b, ref_res_b, **TOL_F32)
    assert jnp.allclose(attn_b, ref_attn_b, **TOL_F32)

    res_b2, _ = ego_attention_forward(ego_b, others_b, params, mask=None, heads=HEADS)
    res_b2 = jax.block_until_ready(res_b2)
    assert jnp.allclose(res_b2, ref_res_b, **TOL_BF16)

    print("KERNEL_OK")
</pallas_src>

<mosaic_0001>
module attributes {stable_mosaic.version = 11 : i64} {
  func.func @_ego_attention_kernel(%arg0: i32, %arg1: memref<16x256xf32, #tpu.memory_space<vmem>>, %arg2: memref<16x32xf32, #tpu.memory_space<vmem>>, %arg3: memref<256x512xf32, #tpu.memory_space<vmem>>, %arg4: memref<32x256xf32, #tpu.memory_space<vmem>>, %arg5: memref<256x32xf32, #tpu.memory_space<vmem>>, %arg6: memref<32x32xf32, #tpu.memory_space<vmem>>, %arg7: memref<32x256xf32, #tpu.memory_space<vmem>>, %arg8: memref<256x32xf32, #tpu.memory_space<vmem>>, %arg9: memref<16x32xf32, #tpu.memory_space<vmem>>, %arg10: memref<16x32xf32, #tpu.memory_space<vmem>>) attributes {dimension_semantics = [#tpu.dimension_semantics<parallel>], iteration_bounds = array<i64: 1>, scalar_prefetch = 0 : i64, scratch_operands = 0 : i64, tpu.core_type = #tpu.core_type<tc>, window_params = [{transform_indices = @transform_0, window_bounds = array<i64: 16, 256>}, {transform_indices = @transform_1, window_bounds = array<i64: 16, 32>}, {pipeline_mode = #tpu.pipeline_mode<synchronous>, transform_indices = @transform_2, window_bounds = array<i64: 256, 512>}, {pipeline_mode = #tpu.pipeline_mode<synchronous>, transform_indices = @transform_3, window_bounds = array<i64: 32, 256>}, {pipeline_mode = #tpu.pipeline_mode<synchronous>, transform_indices = @transform_4, window_bounds = array<i64: 256, 32>}, {pipeline_mode = #tpu.pipeline_mode<synchronous>, transform_indices = @transform_5, window_bounds = array<i64: 32, 32>}, {pipeline_mode = #tpu.pipeline_mode<synchronous>, transform_indices = @transform_6, window_bounds = array<i64: 32, 256>}, {pipeline_mode = #tpu.pipeline_mode<synchronous>, transform_indices = @transform_7, window_bounds = array<i64: 256, 32>}, {transform_indices = @transform_8, window_bounds = array<i64: 16, 32>}, {transform_indices = @transform_9, window_bounds = array<i64: 16, 32>}]} {
    %c0 = arith.constant 0 : index
    %c0_0 = arith.constant 0 : index
    %0 = vector.load %arg1[%c0, %c0_0] : memref<16x256xf32, #tpu.memory_space<vmem>>, vector<16x256xf32>
    %1 = vector.extract_strided_slice %0 {offsets = [0, 0], sizes = [16, 32], strides = [1, 1]} : vector<16x256xf32> to vector<16x32xf32>
    %c0_1 = arith.constant 0 : index
    %c0_2 = arith.constant 0 : index
    %2 = vector.load %arg3[%c0_1, %c0_2] : memref<256x512xf32, #tpu.memory_space<vmem>>, vector<256x512xf32>
    %cst = arith.constant dense<0.000000e+00> : vector<16x512xf32>
    %3 = tpu.matmul %0, %2, %cst {dimension_numbers = #tpu.dot_dimension_numbers<[1], [0], [0], [1], [0, 0, 1, 1], [], []>} : vector<16x256xf32>, vector<256x512xf32>, vector<16x512xf32> -> vector<16x512xf32>
    %4 = vector.extract_strided_slice %3 {offsets = [0, 0], sizes = [16, 256], strides = [1, 1]} : vector<16x512xf32> to vector<16x256xf32>
    %5 = vector.extract_strided_slice %3 {offsets = [0, 256], sizes = [16, 256], strides = [1, 1]} : vector<16x512xf32> to vector<16x256xf32>
    %c0_3 = arith.constant 0 : index
    %c0_4 = arith.constant 0 : index
    %6 = vector.load %arg4[%c0_3, %c0_4] : memref<32x256xf32, #tpu.memory_space<vmem>>, vector<32x256xf32>
    %cst_5 = arith.constant dense<0.000000e+00> : vector<16x256xf32>
    %7 = tpu.matmul %1, %6, %cst_5 {dimension_numbers = #tpu.dot_dimension_numbers<[1], [0], [0], [1], [0, 0, 1, 1], [], []>} : vector<16x32xf32>, vector<32x256xf32>, vector<16x256xf32> -> vector<16x256xf32>
    %8 = arith.mulf %7, %4 : vector<16x256xf32>
    %c0_6 = arith.constant 0 : index
    %c0_7 = arith.constant 0 : index
    %9 = vector.load %arg5[%c0_6, %c0_7] : memref<256x32xf32, #tpu.memory_space<vmem>>, vector<256x32xf32>
    %cst_8 = arith.constant dense<0.000000e+00> : vector<16x32xf32>
    %10 = tpu.matmul %8, %9, %cst_8 {dimension_numbers = #tpu.dot_dimension_numbers<[1], [0], [0], [1], [0, 0, 1, 1], [], []>} : vector<16x256xf32>, vector<256x32xf32>, vector<16x32xf32> -> vector<16x32xf32>
    %cst_9 = arith.constant 0.353553385 : f32
    %11 = vector.broadcast %cst_9 : f32 to vector<16x32xf32>
    %12 = arith.mulf %10, %11 : vector<16x32xf32>
    %c0_10 = arith.constant 0 : index
    %c0_11 = arith.constant 0 : index
    %13 = vector.load %arg2[%c0_10, %c0_11] : memref<16x32xf32, #tpu.memory_space<vmem>>, vector<16x32xf32>
    %14 = arith.addf %12, %13 : vector<16x32xf32>
    %cst_12 = arith.constant dense<0xFF800000> : vector<16xf32>
    %15 = vector.multi_reduction <maximumf>, %14, %cst_12 [1] : vector<16x32xf32> to vector<16xf32>
    %16 = vector.shape_cast %15 : vector<16xf32> to vector<16x1xf32>
    %17 = vector.broadcast %16 : vector<16x1xf32> to vector<16x32xf32>
    %18 = arith.subf %14, %17 : vector<16x32xf32>
    %19 = math.exp %18 : vector<16x32xf32>
    %c0_13 = arith.constant 0 : index
    %c0_14 = arith.constant 0 : index
    %20 = vector.load %arg6[%c0_13, %c0_14] : memref<32x32xf32, #tpu.memory_space<vmem>>, vector<32x32xf32>
    %cst_15 = arith.constant dense<0.000000e+00> : vector<16x32xf32>
    %21 = tpu.matmul %19, %20, %cst_15 {dimension_numbers = #tpu.dot_dimension_numbers<[1], [0], [0], [1], [0, 0, 1, 1], [], []>} : vector<16x32xf32>, vector<32x32xf32>, vector<16x32xf32> -> vector<16x32xf32>
    %22 = tpu.reciprocal %21 {approx = true} : vector<16x32xf32> -> vector<16x32xf32>
    %23 = arith.mulf %19, %22 : vector<16x32xf32>
    %c0_16 = arith.constant 0 : index
    %c0_17 = arith.constant 0 : index
    %24 = vector.load %arg10[%c0_16, %c0_17] : memref<16x32xf32, #tpu.memory_space<vmem>>, vector<16x32xf32>
    tpu.vector_store %arg10[%c0_16, %c0_17], %23 {strides = array<i32>} : memref<16x32xf32, #tpu.memory_space<vmem>>, vector<16x32xf32>,
    %c0_18 = arith.constant 0 : index
    %c0_19 = arith.constant 0 : index
    %25 = vector.load %arg7[%c0_18, %c0_19] : memref<32x256xf32, #tpu.memory_space<vmem>>, vector<32x256xf32>
    %cst_20 = arith.constant dense<0.000000e+00> : vector<16x256xf32>
    %26 = tpu.matmul %23, %25, %cst_20 {dimension_numbers = #tpu.dot_dimension_numbers<[1], [0], [0], [1], [0, 0, 1, 1], [], []>} : vector<16x32xf32>, vector<32x256xf32>, vector<16x256xf32> -> vector<16x256xf32>
    %27 = arith.mulf %26, %5 : vector<16x256xf32>
    %c0_21 = arith.constant 0 : index
    %c0_22 = arith.constant 0 : index
    %28 = vector.load %arg8[%c0_21, %c0_22] : memref<256x32xf32, #tpu.memory_space<vmem>>, vector<256x32xf32>
    %cst_23 = arith.constant dense<0.000000e+00> : vector<16x32xf32>
    %29 = tpu.matmul %27, %28, %cst_23 {dimension_numbers = #tpu.dot_dimension_numbers<[1], [0], [0], [1], [0, 0, 1, 1], [], []>} : vector<16x256xf32>, vector<256x32xf32>, vector<16x32xf32> -> vector<16x32xf32>
    %30 = arith.addf %29, %1 : vector<16x32xf32>
    %cst_24 = arith.constant 5.000000e-01 : f32
    %31 = vector.broadcast %cst_24 : f32 to vector<16x32xf32>
    %32 = arith.mulf %30, %31 : vector<16x32xf32>
    %c0_25 = arith.constant 0 : index
    %c0_26 = arith.constant 0 : index
    %33 = vector.load %arg9[%c0_25, %c0_26] : memref<16x32xf32, #tpu.memory_space<vmem>>, vector<16x32xf32>
    tpu.vector_store %arg9[%c0_25, %c0_26], %32 {strides = array<i32>} : memref<16x32xf32, #tpu.memory_space<vmem>>, vector<16x32xf32>,
    return
  }
  func.func @transform_0(%arg0: i32) -> (i32, i32) {
    %c0_i32 = arith.constant 0 : i32
    %c0_i32_0 = arith.constant 0 : i32
    return %arg0, %c0_i32 : i32, i32
  }
  func.func @transform_1(%arg0: i32) -> (i32, i32) {
    %c0_i32 = arith.constant 0 : i32
    %c0_i32_0 = arith.constant 0 : i32
    return %arg0, %c0_i32 : i32, i32
  }
  func.func @transform_2(%arg0: i32) -> (i32, i32) {
    %c0_i32 = arith.constant 0 : i32
    %c0_i32_0 = arith.constant 0 : i32
    %c0_i32_1 = arith.constant 0 : i32
    return %c0_i32, %c0_i32_0 : i32, i32
  }
  func.func @transform_3(%arg0: i32) -> (i32, i32) {
    %c0_i32 = arith.constant 0 : i32
    %c0_i32_0 = arith.constant 0 : i32
    %c0_i32_1 = arith.constant 0 : i32
    return %c0_i32, %c0_i32_0 : i32, i32
  }
  func.func @transform_4(%arg0: i32) -> (i32, i32) {
    %c0_i32 = arith.constant 0 : i32
    %c0_i32_0 = arith.constant 0 : i32
    %c0_i32_1 = arith.constant 0 : i32
    return %c0_i32, %c0_i32_0 : i32, i32
  }
  func.func @transform_5(%arg0: i32) -> (i32, i32) {
    %c0_i32 = arith.constant 0 : i32
    %c0_i32_0 = arith.constant 0 : i32
    %c0_i32_1 = arith.constant 0 : i32
    return %c0_i32, %c0_i32_0 : i32, i32
  }
  func.func @transform_6(%arg0: i32) -> (i32, i32) {
    %c0_i32 = arith.constant 0 : i32
    %c0_i32_0 = arith.constant 0 : i32
    %c0_i32_1 = arith.constant 0 : i32
    return %c0_i32, %c0_i32_0 : i32, i32
  }
  func.func @transform_7(%arg0: i32) -> (i32, i32) {
    %c0_i32 = arith.constant 0 : i32
    %c0_i32_0 = arith.constant 0 : i32
    %c0_i32_1 = arith.constant 0 : i32
    return %c0_i32, %c0_i32_0 : i32, i32
  }
  func.func @transform_8(%arg0: i32) -> (i32, i32) {
    %c0_i32 = arith.constant 0 : i32
    %c0_i32_0 = arith.constant 0 : i32
    return %arg0, %c0_i32 : i32, i32
  }
  func.func @transform_9(%arg0: i32) -> (i32, i32) {
    %c0_i32 = arith.constant 0 : i32
    %c0_i32_0 = arith.constant 0 : i32
    return %arg0, %c0_i32 : i32, i32
  }
}

</mosaic_0001>

<bundles_post_ra>
// kernel: tpu_custom_call.1
= control target key start
LH: loop header
LB: loop body
LE: loop exit
PB: predicated region body
PF: predicated region fallthrough
CT: control target
= control target key end

     0   :  { %15 = vsyncpa [#allocation3], 0  ;;  %s1697_s0 = inlined_call_operand.vmem [shape: f32[16,256], index: 0, kind: input, shape index: {}]   ;;  %s1698_s1 = inlined_call_operand.vmem [shape: f32[16,32], index: 1, kind: input, shape index: {}]   ;;  %s1699_s2 = inlined_call_operand.hbm [shape: f32[256,512], index: 2, kind: input, shape index: {}]   ;;  %s1700_s3 = inlined_call_operand.vmem [shape: f32[32,256], index: 3, kind: input, shape index: {}]   ;;  %s1701_s4 = inlined_call_operand.vmem [shape: f32[256,32], index: 4, kind: input, shape index: {}]   ;;  %s1702_s5 = inlined_call_operand.vmem [shape: f32[32,32], index: 5, kind: input, shape index: {}]   ;;  %s1703_s6 = inlined_call_operand.vmem [shape: f32[32,256], index: 6, kind: input, shape index: {}]   ;;  %s1704_s7 = inlined_call_operand.vmem [shape: f32[256,32], index: 7, kind: input, shape index: {}]   ;;  %s1705_s8 = inlined_call_operand.hbm [shape: f32[16,32], index: 8, kind: output, shape index: {0}]   ;;  %s1706_s9 = inlined_call_operand.hbm [shape: f32[16,32], index: 9, kind: output, shape index: {1}]  }
   0x1   :  { %16 = vsyncpa [#allocation4], 0 }
   0x2   :  { %17 = vsyncpa [#allocation7], 0  ;;  %s1287_s30 = smov [#allocation2]   ;;  %s1215_s13 = scalar_lea.hbm %s1699_s2, 16384 }
   0x3   :  { %s27_s10 = sshll.u32 %s1287_s30, 4  ;;  %p1216_p0 = scmp.ne.s32.totalorder %s1699_s2, %s1215_s13  ;;  %s28_s10 = int_to_ptr.vmem [resolvable:$true] %s27_s10 }
   0x4   :  { %p1219_p1 = scmp.lt.u32.totalorder %s1215_s13, %s1699_s2 }
   0x6   :  { %p1221_p2 = pnand %p1219_p1, %p1216_p0 }
   0x8   :  { %1224 = shalt.err (!%p1221_p2)
}
   0x9   :  { %s1225_s18 = scalar_lea.vmem %s28_s10, 16384  ;;  %p1230_p4 = scmp.lt.s32.totalorder %s28_s10, %s28_s10 }
   0xa   :  { %p1226_p3 = scmp.ne.s32.totalorder %s28_s10, %s1225_s18  ;;  %p1231_p5 = scmp.lt.s32.totalorder %s1225_s18, %s1225_s18 }
   0xc   :  { %p1232_p6 = por %p1231_p5, %p1230_p4 }
   0xe   :  { %p1233_p7 = pnand %p1232_p6, %p1226_p3 }
  0x10   :  { %1236 = shalt.err (!%p1233_p7)
}
  0x11   :  { %s1288_s19 = smov 512   ;;  %s1289_s20 = smov 32  }
  0x12   :  { %33 = dma.hbm_to_vmem [thread:$0]  %s1699_s2, 16384, %s28_s10, [#allocation3], %s1288_s19, %s1288_s19, %s1289_s20  }
  0x13   :  { %1281 = dma.done.wait [#allocation3], 16384  }
  0x14   :  { %1282 = vsyncadd [#allocation3], 4294950912  ;;  %v54_v0 = vld [vmem:[#allocation2 + $0x18] sm:$0xff]  ;;  %v53_v2 = vld [vmem:[#allocation2 + $0x10] sm:$0xff]  ;;  %vm341_vm0 = vcmask 261120  }
  0x15   :  { %v58_v1 = vld [vmem:[#allocation2 + $0x38] sm:$0xff]  ;;  %v57_v4 = vld [vmem:[#allocation2 + $0x30] sm:$0xff]  ;;  %v52_v11 = vld [vmem:[#allocation2 + $0x8] sm:$0xff] }
  0x16   :  { %v1047_v3 = vpack.c.bf16 %v58_v1, %v54_v0  ;;  %v62_v5 = vld [vmem:[#allocation2 + $0x58] sm:$0xff]  ;;  %v1049_v7 = vpack.c.bf16 %v57_v4, %v53_v2  ;;  %v61_v9 = vld [vmem:[#allocation2 + $0x50] sm:$0xff]  ;;  %v56_v12 = vld [vmem:[#allocation2 + $0x28] sm:$0xff] }
  0x17   :  { %v66_v6 = vld [vmem:[#allocation2 + $0x78] sm:$0xff]  ;;  %v65_v10 = vld [vmem:[#allocation2 + $0x70] sm:$0xff]  ;;  %v983_v16 = vpack.c.bf16 %v56_v12, %v52_v11  ;;  %v51_v17 = vld [vmem:[#allocation2] sm:$0xff] }
  0x18   :  { %v1051_v8 = vpack.c.bf16 %v66_v6, %v62_v5  ;;  %1048 = vmatprep.subr.bf16.mxu1 %v1047_v3  ;;  %v70_v13 = vld [vmem:[#allocation2 + $0x98] sm:$0xff]  ;;  %v1053_v15 = vpack.c.bf16 %v65_v10, %v61_v9  ;;  %v55_v18 = vld [vmem:[#allocation2 + $0x20] sm:$0xff]  ;;  %v69_v19 = vld [vmem:[#allocation2 + $0x90] sm:$0xff] }
  0x19   :  { %v74_v14 = vld [vmem:[#allocation2 + $0xb8] sm:$0xff]  ;;  %1050 = vmatpush1.bf16.msra.mxu1 %v1049_v7  ;;  %v985_v21 = vpack.c.bf16 %v55_v18, %v51_v17  ;;  %v73_v22 = vld [vmem:[#allocation2 + $0xb0] sm:$0xff]  ;;  %v60_v23 = vld [vmem:[#allocation2 + $0x48] sm:$0xff]  ;;  %984 = vmatprep.subr.bf16.mxu0 %v983_v16 }
  0x1a   :  { %1052 = vmatprep.subr.bf16.mxu1 %v1051_v8  ;;  %v1055_v20 = vpack.c.bf16 %v74_v14, %v70_v13  ;;  %v64_v24 = vld [vmem:[#allocation2 + $0x68] sm:$0xff]  ;;  %v78_v26 = vld [vmem:[#allocation2 + $0xd8] sm:$0xff]  ;;  %v59_v28 = vld [vmem:[#allocation2 + $0x40] sm:$0xff]  ;;  %v1057_v30 = vpack.c.bf16 %v73_v22, %v69_v19 }
  0x1b   :  { %v987_v25 = vpack.c.bf16 %v64_v24, %v60_v23  ;;  %v82_v27 = vld [vmem:[#allocation2 + $0xf8] sm:$0xff]  ;;  %986 = vmatpush1.bf16.msra.mxu0 %v985_v21  ;;  %v63_v29 = vld [vmem:[#allocation2 + $0x60] sm:$0xff]  ;;  %v77_v32 = vld [vmem:[#allocation2 + $0xd0] sm:$0xff] }
  0x1c   :  { %v989_v31 = vpack.c.bf16 %v63_v29, %v59_v28  ;;  %v68_v33 = vld [vmem:[#allocation2 + $0x88] sm:$0xff]  ;;  %v1059_v35 = vpack.c.bf16 %v82_v27, %v78_v26  ;;  %v81_v36 = vld [vmem:[#allocation2 + $0xf0] sm:$0xff]  ;;  %v67_v38 = vld [vmem:[#allocation2 + $0x80] sm:$0xff] }
  0x1d   :  { %1054 = vmatpush1.bf16.msra.mxu1 %v1053_v15  ;;  %988 = vmatprep.subr.bf16.mxu0 %v987_v25  ;;  %v72_v34 = vld [vmem:[#allocation2 + $0xa8] sm:$0xff]  ;;  %v71_v39 = vld [vmem:[#allocation2 + $0xa0] sm:$0xff]  ;;  %v86_v40 = vld [vmem:[#allocation2 + $0x118] sm:$0xff]  ;;  %v1061_v45 = vpack.c.bf16 %v81_v36, %v77_v32 }
  0x1e   :  { %1056 = vmatprep.subr.bf16.mxu1 %v1055_v20  ;;  %v991_v37 = vpack.c.bf16 %v72_v34, %v68_v33  ;;  %v90_v41 = vld [vmem:[#allocation2 + $0x138] sm:$0xff]  ;;  %v76_v42 = vld [vmem:[#allocation2 + $0xc8] sm:$0xff]  ;;  %v993_v43 = vpack.c.bf16 %v71_v39, %v67_v38  ;;  %v85_v46 = vld [vmem:[#allocation2 + $0x110] sm:$0xff] }
  0x1f   :  { %990 = vmatpush1.bf16.msra.mxu0 %v989_v31  ;;  %v80_v44 = vld [vmem:[#allocation2 + $0xe8] sm:$0xff]  ;;  %v75_v48 = vld [vmem:[#allocation2 + $0xc0] sm:$0xff]  ;;  %v1063_v50 = vpack.c.bf16 %v90_v41, %v86_v40  ;;  %v89_v51 = vld [vmem:[#allocation2 + $0x130] sm:$0xff] }
  0x20   :  { %992 = vmatprep.subr.bf16.mxu0 %v991_v37  ;;  %v995_v47 = vpack.c.bf16 %v80_v44, %v76_v42  ;;  %v79_v49 = vld [vmem:[#allocation2 + $0xe0] sm:$0xff]  ;;  %v84_v52 = vld [vmem:[#allocation2 + $0x108] sm:$0xff]  ;;  %v94_v54 = vld [vmem:[#allocation2 + $0x158] sm:$0xff]  ;;  %v1065_v57 = vpack.c.bf16 %v89_v51, %v85_v46 }
  0x21   :  { %1058 = vmatpush1.bf16.msra.mxu1 %v1057_v30  ;;  %v88_v53 = vld [vmem:[#allocation2 + $0x128] sm:$0xff]  ;;  %v98_v55 = vld [vmem:[#allocation2 + $0x178] sm:$0xff]  ;;  %v997_v56 = vpack.c.bf16 %v79_v49, %v75_v48  ;;  %v93_v58 = vld [vmem:[#allocation2 + $0x150] sm:$0xff] }
  0x22   :  { %1060 = vmatprep.subr.bf16.mxu1 %v1059_v35  ;;  %v999_v59 = vpack.c.bf16 %v88_v53, %v84_v52  ;;  %v83_v60 = vld [vmem:[#allocation2 + $0x100] sm:$0xff]  ;;  %v1067_v62 = vpack.c.bf16 %v98_v55, %v94_v54  ;;  %v97_v63 = vld [vmem:[#allocation2 + $0x170] sm:$0xff]  ;;  %v92_v0 = vld [vmem:[#allocation2 + $0x148] sm:$0xff] }
  0x23   :  { %994 = vmatpush1.bf16.msra.mxu0 %v993_v43  ;;  %v87_v61 = vld [vmem:[#allocation2 + $0x120] sm:$0xff]  ;;  %v96_v1 = vld [vmem:[#allocation2 + $0x168] sm:$0xff]  ;;  %v102_v2 = vld [vmem:[#allocation2 + $0x198] sm:$0xff]  ;;  %v1069_v5 = vpack.c.bf16 %v97_v63, %v93_v58 }
  0x24   :  { %996 = vmatprep.subr.bf16.mxu0 %v995_v47  ;;  %v106_v3 = vld [vmem:[#allocation2 + $0x1b8] sm:$0xff]  ;;  %v1001_v4 = vpack.c.bf16 %v87_v61, %v83_v60  ;;  %v101_v6 = vld [vmem:[#allocation2 + $0x190] sm:$0xff]  ;;  %v1003_v7 = vpack.c.bf16 %v96_v1, %v92_v0  ;;  %v91_v8 = vld [vmem:[#allocation2 + $0x140] sm:$0xff] }
  0x25   :  { %1062 = vmatpush1.bf16.msra.mxu1 %v1061_v45  ;;  %v95_v9 = vld [vmem:[#allocation2 + $0x160] sm:$0xff]  ;;  %v1071_v10 = vpack.c.bf16 %v106_v3, %v102_v2  ;;  %v105_v11 = vld [vmem:[#allocation2 + $0x1b0] sm:$0xff]  ;;  %v100_v12 = vld [vmem:[#allocation2 + $0x188] sm:$0xff] }
  0x26   :  { %1064 = vmatprep.subr.bf16.mxu1 %v1063_v50  ;;  %v104_v13 = vld [vmem:[#allocation2 + $0x1a8] sm:$0xff]  ;;  %v110_v14 = vld [vmem:[#allocation2 + $0x1d8] sm:$0xff]  ;;  %v1005_v16 = vpack.c.bf16 %v95_v9, %v91_v8  ;;  %v1073_v17 = vpack.c.bf16 %v105_v11, %v101_v6  ;;  %v109_v18 = vld [vmem:[#allocation2 + $0x1d0] sm:$0xff] }
  0x27   :  { %998 = vmatpush1.bf16.msra.mxu0 %v997_v56  ;;  %v114_v15 = vld [vmem:[#allocation2 + $0x1f8] sm:$0xff]  ;;  %v1007_v19 = vpack.c.bf16 %v104_v13, %v100_v12  ;;  %v99_v20 = vld [vmem:[#allocation2 + $0x180] sm:$0xff]  ;;  %v113_v23 = vld [vmem:[#allocation2 + $0x1f0] sm:$0xff] }
  0x28   :  { %1000 = vmatprep.subr.bf16.mxu0 %v999_v59  ;;  %v103_v21 = vld [vmem:[#allocation2 + $0x1a0] sm:$0xff]  ;;  %v1075_v22 = vpack.c.bf16 %v114_v15, %v110_v14  ;;  %v108_v24 = vld [vmem:[#allocation2 + $0x1c8] sm:$0xff]  ;;  %v118_v26 = vld [vmem:[#allocation2 + $0x218] sm:$0xff]  ;;  %v1077_v29 = vpack.c.bf16 %v113_v23, %v109_v18 }
  0x29   :  { %1066 = vmatpush1.bf16.msra.mxu1 %v1065_v57  ;;  %v112_v25 = vld [vmem:[#allocation2 + $0x1e8] sm:$0xff]  ;;  %v122_v27 = vld [vmem:[#allocation2 + $0x238] sm:$0xff]  ;;  %v1009_v28 = vpack.c.bf16 %v103_v21, %v99_v20  ;;  %v117_v30 = vld [vmem:[#allocation2 + $0x210] sm:$0xff] }
  0x2a   :  { %1068 = vmatprep.subr.bf16.mxu1 %v1067_v62  ;;  %v1011_v31 = vpack.c.bf16 %v112_v25, %v108_v24  ;;  %v107_v32 = vld [vmem:[#allocation2 + $0x1c0] sm:$0xff]  ;;  %v1079_v34 = vpack.c.bf16 %v122_v27, %v118_v26  ;;  %v121_v35 = vld [vmem:[#allocation2 + $0x230] sm:$0xff]  ;;  %v116_v36 = vld [vmem:[#allocation2 + $0x208] sm:$0xff] }
  0x2b   :  { %1002 = vmatpush1.bf16.msra.mxu0 %v1001_v4  ;;  %v111_v33 = vld [vmem:[#allocation2 + $0x1e0] sm:$0xff]  ;;  %v120_v37 = vld [vmem:[#allocation2 + $0x228] sm:$0xff]  ;;  %v126_v38 = vld [vmem:[#allocation2 + $0x258] sm:$0xff]  ;;  %v1081_v41 = vpack.c.bf16 %v121_v35, %v117_v30 }
  0x2c   :  { %1004 = vmatprep.subr.bf16.mxu0 %v1003_v7  ;;  %v130_v39 = vld [vmem:[#allocation2 + $0x278] sm:$0xff]  ;;  %v1013_v40 = vpack.c.bf16 %v111_v33, %v107_v32  ;;  %v125_v42 = vld [vmem:[#allocation2 + $0x250] sm:$0xff]  ;;  %v1015_v43 = vpack.c.bf16 %v120_v37, %v116_v36  ;;  %v115_v44 = vld [vmem:[#allocation2 + $0x200] sm:$0xff] }
  0x2d   :  { %1070 = vmatpush1.bf16.msra.mxu1 %v1069_v5  ;;  %v119_v45 = vld [vmem:[#allocation2 + $0x220] sm:$0xff]  ;;  %v1083_v46 = vpack.c.bf16 %v130_v39, %v126_v38  ;;  %v129_v47 = vld [vmem:[#allocation2 + $0x270] sm:$0xff]  ;;  %v124_v48 = vld [vmem:[#allocation2 + $0x248] sm:$0xff] }
  0x2e   :  { %1072 = vmatprep.subr.bf16.mxu1 %v1071_v10  ;;  %v128_v49 = vld [vmem:[#allocation2 + $0x268] sm:$0xff]  ;;  %v134_v50 = vld [vmem:[#allocation2 + $0x298] sm:$0xff]  ;;  %v1017_v52 = vpack.c.bf16 %v119_v45, %v115_v44  ;;  %v1085_v53 = vpack.c.bf16 %v129_v47, %v125_v42  ;;  %v133_v54 = vld [vmem:[#allocation2 + $0x290] sm:$0xff] }
  0x2f   :  { %1006 = vmatpush1.bf16.msra.mxu0 %v1005_v16  ;;  %v138_v51 = vld [vmem:[#allocation2 + $0x2b8] sm:$0xff]  ;;  %v1019_v55 = vpack.c.bf16 %v128_v49, %v124_v48  ;;  %v123_v56 = vld [vmem:[#allocation2 + $0x240] sm:$0xff]  ;;  %v137_v59 = vld [vmem:[#allocation2 + $0x2b0] sm:$0xff] }
  0x30   :  { %1008 = vmatprep.subr.bf16.mxu0 %v1007_v19  ;;  %v127_v57 = vld [vmem:[#allocation2 + $0x260] sm:$0xff]  ;;  %v1087_v58 = vpack.c.bf16 %v138_v51, %v134_v50  ;;  %v132_v60 = vld [vmem:[#allocation2 + $0x288] sm:$0xff]  ;;  %v142_v62 = vld [vmem:[#allocation2 + $0x2d8] sm:$0xff]  ;;  %v1089_v2 = vpack.c.bf16 %v137_v59, %v133_v54 }
  0x31   :  { %1074 = vmatpush1.bf16.msra.mxu1 %v1073_v17  ;;  %v136_v61 = vld [vmem:[#allocation2 + $0x2a8] sm:$0xff]  ;;  %v146_v63 = vld [vmem:[#allocation2 + $0x2f8] sm:$0xff]  ;;  %v1021_v0 = vpack.c.bf16 %v127_v57, %v123_v56  ;;  %v141_v1 = vld [vmem:[#allocation2 + $0x2d0] sm:$0xff] }
  0x32   :  { %1076 = vmatprep.subr.bf16.mxu1 %v1075_v22  ;;  %v1023_v3 = vpack.c.bf16 %v136_v61, %v132_v60  ;;  %v131_v4 = vld [vmem:[#allocation2 + $0x280] sm:$0xff]  ;;  %v48_v6 = vld [vmem:[%s1697_s0 + $0x8] sm:$0xff]  ;;  %v1091_v7 = vpack.c.bf16 %v146_v63, %v142_v62  ;;  %v145_v8 = vld [vmem:[#allocation2 + $0x2f0] sm:$0xff] }
  0x33   :  { %1010 = vmatpush1.bf16.msra.mxu0 %v1009_v28  ;;  %v135_v5 = vld [vmem:[#allocation2 + $0x2a0] sm:$0xff]  ;;  %v140_v9 = vld [vmem:[#allocation2 + $0x2c8] sm:$0xff]  ;;  %320 = vmatprep.mubr.f32.mxu1 %v48_v6  ;;  %v150_v11 = vld [vmem:[#allocation2 + $0x318] sm:$0xff]  ;;  %v1093_v14 = vpack.c.bf16 %v145_v8, %v141_v1 }
  0x34   :  { %1012 = vmatprep.subr.bf16.mxu0 %v1011_v31  ;;  %v144_v10 = vld [vmem:[#allocation2 + $0x2e8] sm:$0xff]  ;;  %v154_v12 = vld [vmem:[#allocation2 + $0x338] sm:$0xff]  ;;  %243 = vmatprep.mubr.f32.mxu0 %v48_v6  ;;  %v1025_v13 = vpack.c.bf16 %v135_v5, %v131_v4  ;;  %v149_v15 = vld [vmem:[#allocation2 + $0x310] sm:$0xff] }
  0x35   :  { %1078 = vmatpush1.bf16.msra.mxu1 %v1077_v29  ;;  %v1027_v16 = vpack.c.bf16 %v144_v10, %v140_v9  ;;  %v139_v17 = vld [vmem:[#allocation2 + $0x2c0] sm:$0xff]  ;;  %v1095_v19 = vpack.c.bf16 %v154_v12, %v150_v11  ;;  %v153_v20 = vld [vmem:[#allocation2 + $0x330] sm:$0xff]  ;;  %v148_v21 = vld [vmem:[#allocation2 + $0x308] sm:$0xff] }
  0x36   :  { %1080 = vmatprep.subr.bf16.mxu1 %v1079_v34  ;;  %v143_v18 = vld [vmem:[#allocation2 + $0x2e0] sm:$0xff]  ;;  %v152_v22 = vld [vmem:[#allocation2 + $0x328] sm:$0xff]  ;;  %v158_v23 = vld [vmem:[#allocation2 + $0x358] sm:$0xff]  ;;  %v1097_v26 = vpack.c.bf16 %v153_v20, %v149_v15 }
  0x37   :  { %1014 = vmatpush1.bf16.msra.mxu0 %v1013_v40  ;;  %v162_v24 = vld [vmem:[#allocation2 + $0x378] sm:$0xff]  ;;  %v1029_v25 = vpack.c.bf16 %v143_v18, %v139_v17  ;;  %v157_v27 = vld [vmem:[#allocation2 + $0x350] sm:$0xff]  ;;  %v1031_v28 = vpack.c.bf16 %v152_v22, %v148_v21  ;;  %v147_v29 = vld [vmem:[#allocation2 + $0x300] sm:$0xff] }
  0x38   :  { %1016 = vmatprep.subr.bf16.mxu0 %v1015_v43  ;;  %v151_v30 = vld [vmem:[#allocation2 + $0x320] sm:$0xff]  ;;  %v1099_v31 = vpack.c.bf16 %v162_v24, %v158_v23  ;;  %v161_v32 = vld [vmem:[#allocation2 + $0x370] sm:$0xff]  ;;  %v156_v33 = vld [vmem:[#allocation2 + $0x348] sm:$0xff]  ;;  %v1290_v23 = vmov 0.0  }
  0x39   :  { %1082 = vmatpush1.bf16.msra.mxu1 %v1081_v41  ;;  %v160_v34 = vld [vmem:[#allocation2 + $0x368] sm:$0xff]  ;;  %v166_v35 = vld [vmem:[#allocation2 + $0x398] sm:$0xff]  ;;  %v1033_v37 = vpack.c.bf16 %v151_v30, %v147_v29  ;;  %v1101_v38 = vpack.c.bf16 %v161_v32, %v157_v27  ;;  %v165_v39 = vld [vmem:[#allocation2 + $0x390] sm:$0xff] }
  0x3a   :  { %1084 = vmatprep.subr.bf16.mxu1 %v1083_v46  ;;  %v170_v36 = vld [vmem:[#allocation2 + $0x3b8] sm:$0xff]  ;;  %v1035_v40 = vpack.c.bf16 %v160_v34, %v156_v33  ;;  %v155_v41 = vld [vmem:[#allocation2 + $0x340] sm:$0xff]  ;;  %v169_v44 = vld [vmem:[#allocation2 + $0x3b0] sm:$0xff] }
  0x3b   :  { %1018 = vmatpush1.bf16.msra.mxu0 %v1017_v52  ;;  %v159_v42 = vld [vmem:[#allocation2 + $0x360] sm:$0xff]  ;;  %v1103_v43 = vpack.c.bf16 %v170_v36, %v166_v35  ;;  %v164_v45 = vld [vmem:[#allocation2 + $0x388] sm:$0xff]  ;;  %v174_v47 = vld [vmem:[#allocation2 + $0x3d8] sm:$0xff]  ;;  %v1105_v50 = vpack.c.bf16 %v169_v44, %v165_v39 }
  0x3c   :  { %1020 = vmatprep.subr.bf16.mxu0 %v1019_v55  ;;  %v168_v46 = vld [vmem:[#allocation2 + $0x3a8] sm:$0xff]  ;;  %v178_v48 = vld [vmem:[#allocation2 + $0x3f8] sm:$0xff]  ;;  %v1037_v49 = vpack.c.bf16 %v159_v42, %v155_v41  ;;  %v173_v51 = vld [vmem:[#allocation2 + $0x3d0] sm:$0xff] }
  0x3d   :  { %1086 = vmatpush1.bf16.msra.mxu1 %v1085_v53  ;;  %v1039_v52 = vpack.c.bf16 %v168_v46, %v164_v45  ;;  %v163_v53 = vld [vmem:[#allocation2 + $0x380] sm:$0xff]  ;;  %v1107_v55 = vpack.c.bf16 %v178_v48, %v174_v47  ;;  %v177_v56 = vld [vmem:[#allocation2 + $0x3f0] sm:$0xff]  ;;  %v172_v57 = vld [vmem:[#allocation2 + $0x3c8] sm:$0xff] }
  0x3e   :  { %1088 = vmatprep.subr.bf16.mxu1 %v1087_v58  ;;  %v167_v54 = vld [vmem:[#allocation2 + $0x3a0] sm:$0xff]  ;;  %v176_v58 = vld [vmem:[#allocation2 + $0x3e8] sm:$0xff]  ;;  %v336_v60 = vld [vmem:[%s1700_s3 + $0x18] sm:$0xff]  ;;  %v1109_v62 = vpack.c.bf16 %v177_v56, %v173_v51 }
  0x3f   :  { %1022 = vmatpush1.bf16.msra.mxu0 %v1021_v0  ;;  %v334_v59 = vld [vmem:[%s1700_s3 + $0x8] sm:$0xff]  ;;  %v1041_v61 = vpack.c.bf16 %v167_v54, %v163_v53  ;;  %v1043_v63 = vpack.c.bf16 %v176_v58, %v172_v57  ;;  %v171_v0 = vld [vmem:[#allocation2 + $0x3c0] sm:$0xff]  ;;  %v335_v4 = vld [vmem:[%s1700_s3 + $0x10] sm:$0xff] }
  0x40   :  { %1024 = vmatprep.subr.bf16.mxu0 %v1023_v3  ;;  %v175_v1 = vld [vmem:[#allocation2 + $0x3e0] sm:$0xff]  ;;  %v338_v5 = vld [vmem:[%s1700_s3 + $0x28] sm:$0xff]  ;;  %v340_v6 = vld [vmem:[%s1700_s3 + $0x38] sm:$0xff] }
  0x41   :  { %1090 = vmatpush1.bf16.msra.mxu1 %v1089_v2  ;;  %v1111_v2 = vpack.c.bf16 %v336_v60, %v334_v59  ;;  %v333_v3 = vld [vmem:[%s1700_s3] sm:$0xff]  ;;  %v50_v10 = vld [vmem:[%s1697_s0 + $0x18] sm:$0xff]  ;;  %v1115_v11 = vpack.c.bf16 %v340_v6, %v338_v5  ;;  %v446_v15 = vld [vmem:[%s1701_s4 + $0x88] sm:$0xff] }
  0x42   :  { %1092 = vmatprep.subr.bf16.mxu1 %v1091_v7  ;;  %v1045_v7 = vpack.c.bf16 %v175_v1, %v171_v0  ;;  %v1381_v8 = vld [vmem:[%s1697_s0] sm:$0xff]  ;;  %v1113_v9 = vpack.c.bf16 %v335_v4, %v333_v3  ;;  %v430_v20 = vld [vmem:[%s1701_s4 + $0x8] sm:$0xff]  ;;  %v447_v21 = vld [vmem:[%s1701_s4 + $0x90] sm:$0xff] }
  0x43   :  { %1026 = vmatpush1.bf16.msra.mxu0 %v1025_v13  ;;  %v337_v12 = vld [vmem:[%s1700_s3 + $0x20] sm:$0xff]  ;;  %v339_v13 = vld [vmem:[%s1700_s3 + $0x30] sm:$0xff]  ;;  %v448_v22 = vld [vmem:[%s1701_s4 + $0x98] sm:$0xff] }
  0x44   :  { %1028 = vmatprep.subr.bf16.mxu0 %v1027_v16  ;;  %v1402_v16 = vld [vmem:[%s1697_s0 + $0x10] sm:$0xff]  ;;  %v1117_v17 = vpack.c.bf16 %v339_v13, %v337_v12  ;;  %v432_v27 = vld [vmem:[%s1701_s4 + $0x18] sm:$0xff]  ;;  %v450_v29 = vld [vmem:[%s1701_s4 + $0xa8] sm:$0xff] }
  0x45   :  { %1094 = vmatpush1.bf16.msra.mxu1 %v1093_v14  ;;  %v445_v14 = vld [vmem:[%s1701_s4 + $0x80] sm:$0xff]  ;;  %v434_v33 = vld [vmem:[%s1701_s4 + $0x28] sm:$0xff]  ;;  %v451_v34 = vld [vmem:[%s1701_s4 + $0xb0] sm:$0xff] }
  0x46   :  { %1096 = vmatprep.subr.bf16.mxu1 %v1095_v19  ;;  %v1119_v18 = vpack.c.bf16 %v446_v15, %v445_v14  ;;  %v429_v19 = vld [vmem:[%s1701_s4] sm:$0xff]  ;;  %v452_v35 = vld [vmem:[%s1701_s4 + $0xb8] sm:$0xff]  ;;  %v454_v41 = vld [vmem:[%s1701_s4 + $0xc8] sm:$0xff] }
  0x47   :  { %1030 = vmatpush1.bf16.msra.mxu0 %v1029_v25  ;;  %v1121_v24 = vpack.c.bf16 %v430_v20, %v429_v19  ;;  %v1123_v25 = vpack.c.bf16 %v448_v22, %v447_v21  ;;  %v433_v32 = vld [vmem:[%s1701_s4 + $0x20] sm:$0xff]  ;;  %v436_v39 = vld [vmem:[%s1701_s4 + $0x38] sm:$0xff]  ;;  %v438_v45 = vld [vmem:[%s1701_s4 + $0x48] sm:$0xff] }
  0x48   :  { %1032 = vmatprep.subr.bf16.mxu0 %v1031_v28  ;;  %v449_v28 = vld [vmem:[%s1701_s4 + $0xa0] sm:$0xff]  ;;  %v1129_v36 = vpack.c.bf16 %v434_v33, %v433_v32  ;;  %v455_v47 = vld [vmem:[%s1701_s4 + $0xd0] sm:$0xff]  ;;  %v456_v48 = vld [vmem:[%s1701_s4 + $0xd8] sm:$0xff] }
  0x49   :  { %1098 = vmatpush1.bf16.msra.mxu1 %v1097_v26  ;;  %v431_v26 = vld [vmem:[%s1701_s4 + $0x10] sm:$0xff]  ;;  %v437_v44 = vld [vmem:[%s1701_s4 + $0x40] sm:$0xff]  ;;  %v440_v51 = vld [vmem:[%s1701_s4 + $0x58] sm:$0xff] }
  0x4a   :  { %1100 = vmatprep.subr.bf16.mxu1 %v1099_v31  ;;  %v1125_v30 = vpack.c.bf16 %v432_v27, %v431_v26  ;;  %v1127_v31 = vpack.c.bf16 %v450_v29, %v449_v28  ;;  %v1137_v46 = vpack.c.bf16 %v438_v45, %v437_v44  ;;  %v457_v53 = vld [vmem:[%s1701_s4 + $0xe0] sm:$0xff]  ;;  %v458_v54 = vld [vmem:[%s1701_s4 + $0xe8] sm:$0xff]  ;;  %v459_v59 = vld [vmem:[%s1701_s4 + $0xf0] sm:$0xff] }
  0x4b   :  { %1034 = vmatpush1.bf16.msra.mxu0 %v1033_v37  ;;  %v1131_v37 = vpack.c.bf16 %v452_v35, %v451_v34  ;;  %v441_v56 = vld [vmem:[%s1701_s4 + $0x60] sm:$0xff]  ;;  %v442_v57 = vld [vmem:[%s1701_s4 + $0x68] sm:$0xff]  ;;  %v460_v60 = vld [vmem:[%s1701_s4 + $0xf8] sm:$0xff] }
  0x4c   :  { %1036 = vmatprep.subr.bf16.mxu0 %v1035_v40  ;;  %v453_v40 = vld [vmem:[%s1701_s4 + $0xc0] sm:$0xff]  ;;  %v1145_v58 = vpack.c.bf16 %v442_v57, %v441_v56  ;;  %v539_v29 = vld [vmem:[%s1698_s1 + $0x8] sm:$0xff] }
  0x4d   :  { %1102 = vmatpush1.bf16.msra.mxu1 %v1101_v38  ;;  %v435_v38 = vld [vmem:[%s1701_s4 + $0x30] sm:$0xff]  ;;  %v538_v22 = vld [vmem:[%s1698_s1] sm:$0xff]  ;;  %v555_v35 = vld [vmem:[%s1702_s5 + $0x8] sm:$0xff] }
  0x4e   :  { %1104 = vmatprep.subr.bf16.mxu1 %v1103_v43  ;;  %v1133_v42 = vpack.c.bf16 %v436_v39, %v435_v38  ;;  %v1135_v43 = vpack.c.bf16 %v454_v41, %v453_v40  ;;  %v554_v34 = vld [vmem:[%s1702_s5] sm:$0xff]  ;;  %v557_v38 = vld [vmem:[%s1702_s5 + $0x18] sm:$0xff] }
  0x4f   :  { %1038 = vmatpush1.bf16.msra.mxu0 %v1037_v49  ;;  %v1139_v49 = vpack.c.bf16 %v456_v48, %v455_v47  ;;  %v646_v48 = vld [vmem:[%s1703_s6 + $0x8] sm:$0xff]  ;;  %v649_v57 = vld [vmem:[%s1703_s6 + $0x20] sm:$0xff] }
  0x50   :  { %1040 = vmatprep.subr.bf16.mxu0 %v1039_v52 }
  0x51   :  { %1106 = vmatpush1.bf16.msra.mxu1 %v1105_v50  ;;  %v439_v50 = vld [vmem:[%s1701_s4 + $0x50] sm:$0xff] }
  0x52   :  { %1108 = vmatprep.subr.bf16.mxu1 %v1107_v55  ;;  %v1141_v52 = vpack.c.bf16 %v440_v51, %v439_v50  ;;  %v1143_v55 = vpack.c.bf16 %v458_v54, %v457_v53  ;;  %v645_v51 = vld [vmem:[%s1703_s6] sm:$0xff]  ;;  %v650_v54 = vld [vmem:[%s1703_s6 + $0x28] sm:$0xff] }
  0x53   :  { %1042 = vmatpush1.bf16.msra.mxu0 %v1041_v61  ;;  %v1147_v61 = vpack.c.bf16 %v460_v60, %v459_v59  ;;  %v756_v60 = vld [vmem:[%s1704_s7 + $0x80] sm:$0xff] }
  0x54   :  { %1044 = vmatprep.subr.bf16.mxu0 %v1043_v63  ;;  %v444_v63 = vld [vmem:[%s1701_s4 + $0x78] sm:$0xff] }
  0x55   :  { %1110 = vmatpush1.bf16.msra.mxu1 %v1109_v62  ;;  %v443_v62 = vld [vmem:[%s1701_s4 + $0x70] sm:$0xff] }
  0x56   :  { %1112 = vmatprep.subr.bf16.mxu1 %v1111_v2  ;;  %v1149_v0 = vpack.c.bf16 %v444_v63, %v443_v62 }
  0x57   :  { %1046 = vmatpush1.bf16.msra.mxu0 %v1045_v7 }
  0x58   :  { %321 = vmatmul.mubr.f32.vlgmr.msra.gmra.mrb[0].mxu1 %v1381_v8 }
  0x59   :  { %1114 = vmatpush1.bf16.msra.mxu1 %v1113_v9  ;;  %326 = vmatprep.mubr.f32.mxu1 %v50_v10 }
  0x5a   :  { %1116 = vmatprep.subr.bf16.mxu1 %v1115_v11  ;;  %244 = vmatmul.mubr.f32.vlgmr.msra.gmra.mrb[0].mxu0 %v1381_v8 }
  0x5b   :  { %249 = vmatprep.mubr.f32.mxu0 %v50_v10 }
  0x5c   :  { %327 = vmatmul.mubr.f32.gmra.mrb[2].mxu1 %v1402_v16 }
  0x5d   :  { %1118 = vmatpush1.bf16.msra.mxu1 %v1117_v17  ;;  %412 = vmatprep.mubr.f32.mxu1 %v1290_v23 }
  0x5e   :  { %1120 = vmatprep.subr.bf16.mxu1 %v1119_v18  ;;  %250 = vmatmul.mubr.f32.gmra.mrb[2].mxu0 %v1402_v16 }
  0x5f   :  { %723 = vmatprep.mubr.f32.mxu0 %v1290_v23 }
  0x60   :  { %884 = vmatmul.mubr.msk.f32.vlgmr.msra.gmra.mrb[4].mxu1 %vm341_vm0, %v1381_v8 }
  0x61   :  { %418 = vmatprep.mubr.f32.mxu1 %v1290_v23  ;;  %1122 = vmatpush3.bf16.msra.mxu1 %v1121_v24 }
  0x62   :  { %1124 = vmatprep.subr.bf16.mxu1 %v1123_v25 }
  0x64   :  { %885 = vmatmul.mubr.msk.f32.gmra.mrb[6].mxu1 %vm341_vm0, %v1402_v16 }
  0x65   :  { %1126 = vmatpush3.bf16.msra.mxu1 %v1125_v30 }
  0x66   :  { %1128 = vmatprep.subr.bf16.mxu1 %v1127_v31 }
  0x69   :  { %1130 = vmatpush3.bf16.msra.mxu1 %v1129_v36  ;;  %v556_v36 = vld [vmem:[%s1702_s5 + $0x10] sm:$0xff] }
  0x6a   :  { %1132 = vmatprep.subr.bf16.mxu1 %v1131_v37  ;;  %v1151_v37 = vpack.c.bf16 %v555_v35, %v554_v34  ;;  %v1155_v39 = vpack.c.bf16 %v557_v38, %v556_v36  ;;  %v748_v35 = vld [vmem:[%s1704_s7 + $0x40] sm:$0xff]  ;;  %v749_v36 = vld [vmem:[%s1704_s7 + $0x48] sm:$0xff]  ;;  %v767_v38 = vld [vmem:[%s1704_s7 + $0xd8] sm:$0xff] }
  0x6d   :  { %1134 = vmatpush3.bf16.msra.mxu1 %v1133_v42 }
  0x6e   :  { %1136 = vmatprep.subr.bf16.mxu1 %v1135_v43 }
  0x71   :  { %1138 = vmatpush3.bf16.msra.mxu1 %v1137_v46 }
  0x72   :  { %1140 = vmatprep.subr.bf16.mxu1 %v1139_v49  ;;  %v648_v49 = vld [vmem:[%s1703_s6 + $0x18] sm:$0xff] }
  0x73   :  { %v1159_v50 = vpack.c.bf16 %v648_v49, %v646_v48  ;;  %v753_v48 = vld [vmem:[%s1704_s7 + $0x68] sm:$0xff] }
  0x75   :  { %1142 = vmatpush3.bf16.msra.mxu1 %v1141_v52  ;;  %v647_v52 = vld [vmem:[%s1703_s6 + $0x10] sm:$0xff]  ;;  %1160 = vmatprep.subr.bf16.mxu0 %v1159_v50 }
  0x76   :  { %1144 = vmatprep.subr.bf16.mxu1 %v1143_v55  ;;  %v1161_v53 = vpack.c.bf16 %v647_v52, %v645_v51  ;;  %v652_v55 = vld [vmem:[%s1703_s6 + $0x38] sm:$0xff]  ;;  %v770_v50 = vld [vmem:[%s1704_s7 + $0xf0] sm:$0xff] }
  0x77   :  { %v1163_v56 = vpack.c.bf16 %v652_v55, %v650_v54  ;;  %v771_v51 = vld [vmem:[%s1704_s7 + $0xf8] sm:$0xff] }
  0x78   :  { %1162 = vmatpush1.bf16.msra.mxu0 %v1161_v53  ;;  %v1195_v52 = vpack.c.bf16 %v771_v51, %v770_v50  ;;  %v754_v53 = vld [vmem:[%s1704_s7 + $0x70] sm:$0xff]  ;;  %v755_v54 = vld [vmem:[%s1704_s7 + $0x78] sm:$0xff] }
  0x79   :  { %1146 = vmatpush3.bf16.msra.mxu1 %v1145_v58  ;;  %v651_v58 = vld [vmem:[%s1703_s6 + $0x30] sm:$0xff]  ;;  %1164 = vmatprep.subr.bf16.mxu0 %v1163_v56  ;;  %v1197_v55 = vpack.c.bf16 %v755_v54, %v754_v53 }
  0x7a   :  { %1148 = vmatprep.subr.bf16.mxu1 %v1147_v61  ;;  %v1165_v59 = vpack.c.bf16 %v651_v58, %v649_v57  ;;  %v757_v61 = vld [vmem:[%s1704_s7 + $0x88] sm:$0xff] }
  0x7b   :  { %v1167_v62 = vpack.c.bf16 %v757_v61, %v756_v60 }
  0x7c   :  { %1166 = vmatpush1.bf16.msra.mxu0 %v1165_v59 }
  0x7d   :  { %1150 = vmatpush3.bf16.msra.mxu1 %v1149_v0  ;;  %1168 = vmatprep.subr.bf16.mxu0 %v1167_v62 }
  0x7e   :  { %1152 = vmatprep.subr.bf16.mxu1 %v1151_v37 }
 0x12b   :  { %v1504_v1 = vpop.f32.mrb[0].mxu1 }
 0x12c   :  { %v1506_v2 = vpop.f32.mrb[1].mxu1 }
 0x12d   :  { %v245_v3 = vpop.f32.mrb[0].mxu0 }
 0x12e   :  { %v247_v5 = vpop.f32.mrb[1].mxu0 }
 0x12f   :  { %v1508_v4 = vpop.f32.mrb[2].mxu1 }
 0x130   :  { %v1510_v6 = vpop.f32.mrb[3].mxu1 }
 0x131   :  { %v251_v7 = vpop.f32.mrb[2].mxu0 }
 0x132   :  { %v253_v10 = vpop.f32.mrb[3].mxu0 }
 0x133   :  { %v414_v9 = vpop.f32.mrb[4].mxu1 }
 0x134   :  { %v425_v11 = vmul.f32 %v414_v9, %v245_v3  ;;  %v416_v12 = vpop.f32.mrb[5].mxu1  ;;  %v740_v3 = vld [vmem:[%s1704_s7] sm:$0xff]  ;;  %v759_v9 = vld [vmem:[%s1704_s7 + $0x98] sm:$0xff] }
 0x135   :  { %v426_v13 = vmul.f32 %v416_v12, %v247_v5  ;;  %v741_v5 = vld [vmem:[%s1704_s7 + $0x8] sm:$0xff] }
 0x137   :  { %v420_v14 = vpop.f32.mrb[6].mxu1  ;;  %525 = vmatprep.mubr.f32.mxu1 %v426_v13  ;;  %v1169_v13 = vpack.c.bf16 %v741_v5, %v740_v3 }
 0x138   :  { %v427_v15 = vmul.f32 %v420_v14, %v251_v7  ;;  %v422_v17 = vpop.f32.mrb[7].mxu1  ;;  %526 = vmatmul.mubr.f32.vlgmr.msra.gmra.mrb[8].mxu1 %v425_v11  ;;  %v758_v7 = vld [vmem:[%s1704_s7 + $0x90] sm:$0xff] }
 0x139   :  { %v428_v18 = vmul.f32 %v422_v17, %v253_v10  ;;  %1154 = vmatpush3.bf16.msra.mxu1 %v1151_v37  ;;  %v742_v17 = vld [vmem:[%s1704_s7 + $0x10] sm:$0xff] }
 0x13a   :  { %1156 = vmatprep.subr.bf16.mxu1 %v1155_v39  ;;  %v766_v37 = vld [vmem:[%s1704_s7 + $0xd0] sm:$0xff] }
 0x13b   :  { %530 = vmatprep.mubr.f32.mxu1 %v428_v18  ;;  %v743_v18 = vld [vmem:[%s1704_s7 + $0x18] sm:$0xff] }
 0x13c   :  { %531 = vmatmul.mubr.f32.gmra.mrb[10].mxu1 %v427_v15  ;;  %v1171_v15 = vpack.c.bf16 %v759_v9, %v758_v7 }
 0x13d   :  { %1158 = vmatpush3.bf16.msra.mxu1 %v1155_v39  ;;  %v1185_v39 = vpack.c.bf16 %v749_v36, %v748_v35 }
 0x20b   :  { %v922_v19 = vpop.f32.mrb[8].mxu1 }
 0x20c   :  { %v923_v20 = vpop.f32.mrb[9].mxu1 }
 0x20d   :  { %v924_v21 = vadd.f32 %v923_v20, %v922_v19  ;;  %v760_v19 = vld [vmem:[%s1704_s7 + $0xa0] sm:$0xff]  ;;  %v761_v20 = vld [vmem:[%s1704_s7 + $0xa8] sm:$0xff] }
 0x20f   :  { %v536_v24 = vmul.f32 0.35355338, %v924_v21  ;;  %v925_v25 = vpop.f32.mrb[10].mxu1  ;;  %v1173_v21 = vpack.c.bf16 %v743_v18, %v742_v17 }
 0x210   :  { %v926_v26 = vpop.f32.mrb[11].mxu1 }
 0x211   :  { %v927_v27 = vadd.f32 %v926_v26, %v925_v25  ;;  %v540_v28 = vadd.f32 %v538_v22, %v536_v24  ;;  %v1175_v22 = vpack.c.bf16 %v761_v20, %v760_v19  ;;  %v744_v24 = vld [vmem:[%s1704_s7 + $0x20] sm:$0xff]  ;;  %v745_v25 = vld [vmem:[%s1704_s7 + $0x28] sm:$0xff]  ;;  %v762_v26 = vld [vmem:[%s1704_s7 + $0xb0] sm:$0xff] }
 0x213   :  { %v537_v30 = vmul.f32 0.35355338, %v927_v27  ;;  %v542_v31 = vsel %vm341_vm0, %v540_v28, -inf  ;;  %v1177_v27 = vpack.c.bf16 %v745_v25, %v744_v24 }
 0x214   :  { %543 = vmax.xlane.f32.xlu0 %v542_v31  ;;  %v764_v31 = vld [vmem:[%s1704_s7 + $0xc0] sm:$0xff] }
 0x215   :  { %v541_v32 = vadd.f32 %v539_v29, %v537_v30  ;;  %v746_v29 = vld [vmem:[%s1704_s7 + $0x30] sm:$0xff]  ;;  %v747_v30 = vld [vmem:[%s1704_s7 + $0x38] sm:$0xff] }
 0x217   :  { %v545_v33 = vsel %vm341_vm0, %v541_v32, -inf }
 0x218   :  { %546 = vmax.xlane.f32.xlu0 %v545_v33  ;;  %v1181_v33 = vpack.c.bf16 %v747_v30, %v746_v29 }
 0x2a1   :  { %v544_v40 = vpop.xlane.xlu0 %543 }
 0x2a2   :  { %v548_v41 = vsub.f32 %v540_v28, %v544_v40  ;;  %v1187_v40 = vpack.c.bf16 %v767_v38, %v766_v37 }
 0x2a4   :  { %v550_v42 = vmul.f32 1.442695, %v548_v41  ;;  %v750_v41 = vld [vmem:[%s1704_s7 + $0x50] sm:$0xff] }
 0x2a5   :  { %v547_v43 = vpop.xlane.xlu0 %546 }
 0x2a6   :  { %1207 = vpow2.f32 %v550_v42  ;;  %v549_v44 = vsub.f32 %v541_v32, %v547_v43  ;;  %v765_v32 = vld [vmem:[%s1704_s7 + $0xc8] sm:$0xff]  ;;  %v751_v42 = vld [vmem:[%s1704_s7 + $0x58] sm:$0xff]  ;;  %v768_v43 = vld [vmem:[%s1704_s7 + $0xe0] sm:$0xff] }
 0x2a7   :  { %v1183_v34 = vpack.c.bf16 %v765_v32, %v764_v31 }
 0x2a8   :  { %v552_v45 = vmul.f32 1.442695, %v549_v44  ;;  %v769_v44 = vld [vmem:[%s1704_s7 + $0xe8] sm:$0xff] }
 0x2aa   :  { %1209 = vpow2.f32 %v552_v45  ;;  %v1189_v45 = vpack.c.bf16 %v751_v42, %v750_v41 }
 0x2b0   :  { %v1208_v46 = vpop.eup %1207 }
 0x2b1   :  { %980 = vmatprep.mubr.msk.f32.mxu1 %vm341_vm0, %v1208_v46 }
 0x2b4   :  { %v1210_v47 = vpop.eup %1209 }
 0x2b5   :  { %981 = vmatmul.mubr.msk.f32.vlgmr.msra.gmra.mrb[12].mxu1 %vm341_vm0, %v1210_v47 }
 0x388   :  { %v982_v63 = vpop.f32.mrb[12].mxu1 }
 0x389   :  { %1211 = vrcp.f32 %v982_v63  ;;  %v630_v0 = vpop.f32.mrb[13].mxu1 }
 0x38a   :  { %1213 = vrcp.f32 %v630_v0 }
 0x393   :  { %v1212_v10 = vpop.eup %1211 }
 0x394   :  { %v1214_v11 = vpop.eup %1213  ;;  %v642_v12 = vmul.f32 %v1212_v10, %v1210_v47  ;;  %v752_v47 = vld [vmem:[%s1704_s7 + $0x60] sm:$0xff] }
 0x395   :  { %v641_v14 = vmul.f32 %v1214_v11, %v1208_v46  ;;  %v1191_v46 = vpack.c.bf16 %v769_v44, %v768_v43  ;;  %v1193_v49 = vpack.c.bf16 %v753_v48, %v752_v47 }
 0x396   :  { %644 = vst.msk [vmem:[#allocation6 + $0x8] sm:$0xff] %vm341_vm0, %v642_v12 }
 0x397   :  { %643 = vst.msk [vmem:[#allocation6] sm:$0xff] %vm341_vm0, %v641_v14  ;;  %888 = vmatmul.mubr.msk.f32.vlgmr.msra.gmra.mrb[4].mxu0 %vm341_vm0, %v641_v14 }
 0x398   :  { %729 = vmatprep.mubr.f32.mxu0 %v1290_v23  ;;  %1170 = vmatpush3.bf16.msra.mxu0 %v1169_v13  ;;  %v763_v23 = vld [vmem:[%s1704_s7 + $0xb8] sm:$0xff]  ;;  %s1291_s7 = smov [#allocation6]  }
 0x399   :  { %1172 = vmatprep.subr.bf16.mxu0 %v1171_v15  ;;  %v1179_v28 = vpack.c.bf16 %v763_v23, %v762_v26  ;;  %s868_s23 = sshll.u32 %s1291_s7, 4  ;;  %s869_s23 = int_to_ptr.vmem [resolvable:$true] %s868_s23 }
 0x39a   :  { %s1237_s24 = scalar_lea.vmem %s869_s23, 256  ;;  %p1242_p9 = scmp.lt.s32.totalorder %s869_s23, %s869_s23 }
 0x39b   :  { %889 = vmatmul.mubr.msk.f32.gmra.mrb[6].mxu0 %vm341_vm0, %v642_v12  ;;  %p1238_p8 = scmp.ne.s32.totalorder %s869_s23, %s1237_s24  ;;  %p1243_p10 = scmp.lt.s32.totalorder %s1237_s24, %s1237_s24 }
 0x39c   :  { %1174 = vmatpush3.bf16.msra.mxu0 %v1173_v21 }
 0x39d   :  { %1176 = vmatprep.subr.bf16.mxu0 %v1175_v22  ;;  %p1244_p11 = por %p1243_p10, %p1242_p9 }
 0x39f   :  { %p1245_p12 = pnand %p1244_p11, %p1238_p8 }
 0x3a0   :  { %1178 = vmatpush3.bf16.msra.mxu0 %v1177_v27 }
 0x3a1   :  { %1180 = vmatprep.subr.bf16.mxu0 %v1179_v28 }
 0x3a4   :  { %1182 = vmatpush3.bf16.msra.mxu0 %v1181_v33 }
 0x3a5   :  { %1184 = vmatprep.subr.bf16.mxu0 %v1183_v34 }
 0x3a8   :  { %1186 = vmatpush3.bf16.msra.mxu0 %v1185_v39 }
 0x3a9   :  { %1188 = vmatprep.subr.bf16.mxu0 %v1187_v40 }
 0x3ac   :  { %1190 = vmatpush3.bf16.msra.mxu0 %v1189_v45 }
 0x3ad   :  { %1192 = vmatprep.subr.bf16.mxu0 %v1191_v46 }
 0x3b0   :  { %1194 = vmatpush3.bf16.msra.mxu0 %v1193_v49 }
 0x3b1   :  { %1196 = vmatprep.subr.bf16.mxu0 %v1195_v52 }
 0x3b4   :  { %1198 = vmatpush3.bf16.msra.mxu0 %v1197_v55 }
 0x46a   :  { %v725_v56 = vpop.f32.mrb[4].mxu0 }
 0x46b   :  { %v736_v57 = vmul.f32 %v725_v56, %v1504_v1  ;;  %v727_v58 = vpop.f32.mrb[5].mxu0 }
 0x46c   :  { %v737_v59 = vmul.f32 %v727_v58, %v1506_v2 }
 0x46e   :  { %v731_v60 = vpop.f32.mrb[6].mxu0  ;;  %836 = vmatprep.mubr.f32.mxu0 %v737_v59 }
 0x46f   :  { %v738_v61 = vmul.f32 %v731_v60, %v1508_v4  ;;  %v733_v62 = vpop.f32.mrb[7].mxu0  ;;  %837 = vmatmul.mubr.f32.vlgmr.msra.gmra.mrb[8].mxu0 %v736_v57 }
 0x470   :  { %v739_v63 = vmul.f32 %v733_v62, %v1510_v6 }
 0x472   :  { %841 = vmatprep.mubr.f32.mxu0 %v739_v63 }
 0x473   :  { %842 = vmatmul.mubr.f32.gmra.mrb[10].mxu0 %v738_v61 }
 0x474   :  { %1248 = shalt.err (!%p1245_p12)
}
 0x475   :  { %s1249_s5 = scalar_lea.hbm %s1706_s9, 256 }
 0x476   :  { %p1250_p13 = scmp.ne.s32.totalorder %s1706_s9, %s1249_s5  ;;  %p1253_p0 = scmp.lt.u32.totalorder %s1249_s5, %s1706_s9 }
 0x478   :  { %p1255_p1 = pnand %p1253_p0, %p1250_p13 }
 0x47a   :  { %1258 = shalt.err (!%p1255_p1)
}
 0x47b   :  { %s1292_s29 = smov 128   ;;  %s1293_s30 = smov 8  }
 0x47c   :  { %874 = dma.vmem_to_hbm [thread:$0]  %s869_s23, 256, %s1706_s9, [#allocation7], %s1292_s29, %s1292_s29, %s1293_s30  }
 0x47d   :  { %s1294_s12 = smov [#allocation5]  }
 0x47e   :  { %s856_s0 = sshll.u32 %s1294_s12, 4  ;;  %s857_s0 = int_to_ptr.vmem [resolvable:$true] %s856_s0 }
 0x47f   :  { %s1259_s9 = scalar_lea.vmem %s857_s0, 256  ;;  %p1264_p3 = scmp.lt.s32.totalorder %s857_s0, %s857_s0 }
 0x480   :  { %p1260_p2 = scmp.ne.s32.totalorder %s857_s0, %s1259_s9  ;;  %p1265_p4 = scmp.lt.s32.totalorder %s1259_s9, %s1259_s9 }
 0x482   :  { %p1266_p5 = por %p1265_p4, %p1264_p3 }
 0x484   :  { %p1267_p6 = pnand %p1266_p5, %p1260_p2 }
 0x542   :  { %v966_v1 = vpop.f32.mrb[8].mxu0 }
 0x543   :  { %v967_v2 = vpop.f32.mrb[9].mxu0 }
 0x544   :  { %v968_v4 = vadd.f32 %v967_v2, %v966_v1 }
 0x546   :  { %v839_v6 = vadd.f32 %v968_v4, %v1381_v8  ;;  %v969_v0 = vpop.f32.mrb[10].mxu0 }
 0x547   :  { %v970_v3 = vpop.f32.mrb[11].mxu0 }
 0x548   :  { %v847_v5 = vmul.f32 0.5, %v839_v6  ;;  %v971_v7 = vadd.f32 %v970_v3, %v969_v0 }
 0x54a   :  { %849 = vst.msk [vmem:[#allocation5] sm:$0xff] %vm341_vm0, %v847_v5  ;;  %v844_v9 = vadd.f32 %v971_v7, %v1402_v16 }
 0x54c   :  { %v848_v10 = vmul.f32 0.5, %v844_v9 }
 0x54e   :  { %850 = vst.msk [vmem:[#allocation5 + $0x8] sm:$0xff] %vm341_vm0, %v848_v10 }
 0x54f   :  { %1270 = shalt.err (!%p1267_p6)
}
 0x550   :  { %s1271_s15 = scalar_lea.hbm %s1705_s8, 256 }
 0x551   :  { %p1272_p7 = scmp.ne.s32.totalorder %s1705_s8, %s1271_s15  ;;  %p1275_p8 = scmp.lt.u32.totalorder %s1271_s15, %s1705_s8 }
 0x553   :  { %p1277_p9 = pnand %p1275_p8, %p1272_p7 }
 0x555   :  { %1280 = shalt.err (!%p1277_p9)
}
 0x556   :  { %862 = dma.vmem_to_hbm [thread:$0]  %s857_s0, 256, %s1705_s8, [#allocation4], %s1292_s29, %s1292_s29, %s1293_s30  }
 0x557   :  { %1283 = dma.done.wait [#allocation4], 256  }
 0x558   :  { %1284 = vsyncadd [#allocation4], 4294967040 }
 0x559   :  { %1285 = dma.done.wait [#allocation7], 256  }
 0x55a   :  { %1286 = vsyncadd [#allocation7], 4294967040 }
 0x55b   :  { %881 = vsyncpa [#allocation3], 1 }
 0x55c   :  { %882 = vsyncpa [#allocation4], 1 }
 0x55d   :  { %883 = vsyncpa [#allocation7], 1 }

</bundles_post_ra>
